<compile_context>
chip_gen: v7x
topology: tpu7x:2x2x1
jax: 0.10.0
libtpu: 0.0.40
codegen_flags: <defaults>
</compile_context>

<pallas_src>
import jax
import jax.numpy as jnp
from jax.experimental import pallas as pl
from jax.experimental.pallas import tpu as pltpu


def _elu(x):
    # ELU, alpha=1.0 (PyTorch default). min() guard keeps exp() finite for x>0.
    return jnp.where(x > 0, x, jnp.exp(jnp.minimum(x, 0.0)) - 1.0)


def _softplus(x):
    # Numerically stable softplus: log(1 + exp(x)) == logaddexp(x, 0).
    return jnp.logaddexp(x, 0.0)


def _round_up(n, m):
    return ((n + m - 1) // m) * m


def policy_kernel(x_ref, w1_ref, b1_ref, w2_ref, b2_ref, out_ref):
    # x_ref : (TILE_B, D_in)   VMEM
    # w1_ref: (D_in, H)        VMEM (grid-resident)
    # b1_ref: (1, H)           VMEM (grid-resident)
    # w2_ref: (H, 2)           VMEM (grid-resident)  [w21 | w22]
    # b2_ref: (1, 2)           SMEM                  [b21 | b22]
    # out_ref:(TILE_B, 2)      VMEM                  [mean | sigma]
    x = x_ref[...]

    # fc1 + ELU  -> hidden activations (TILE_B, H)
    h = jnp.dot(x, w1_ref[...], preferred_element_type=jnp.float32) + b1_ref[...]
    h1 = _elu(h)

    # Fused heads: one MXU pass producing (TILE_B, 2).
    y = jnp.dot(h1, w2_ref[...], preferred_element_type=jnp.float32)

    # Column 0 = mean head (elu), column 1 = sigma head (softplus).
    col = jax.lax.broadcasted_iota(jnp.int32, y.shape, 1)
    b21 = b2_ref[0, 0]
    b22 = b2_ref[0, 1]
    z = y + jnp.where(col == 0, b21, b22)
    out_ref[...] = jnp.where(col == 0, _elu(z), _softplus(z))


def policy_network_forward(x, w1, b1, w21, b21, w22, b22, *, max_tile_b=4096):
    """x: (B, D_in) f32; w*: pre-transposed (in, out); b*: (1, out).
    Returns (action_mean, action_sigma), each (B, 1) f32."""
    B, D_in = x.shape
    H = w1.shape[1]

    # Fuse the two scalar heads (done once per call on the XLA side; cheap).
    w2 = jnp.concatenate([w21, w22], axis=1)   # (H, 2)
    b2 = jnp.concatenate([b21, b22], axis=1)   # (1, 2)

    # Batch tiling: multiple of 8 (f32 sublane), capped well under scoped VMEM
    # (double-buffered x block = tile_b * D_in * 4 * 2 bytes).
    tile_b = min(max_tile_b, _round_up(B, 8))
    b_pad = _round_up(B, tile_b)
    if b_pad != B:
        x = jnp.pad(x, ((0, b_pad - B), (0, 0)))
    grid = (b_pad // tile_b,)

    vmem = pltpu.MemorySpace.VMEM
    out = pl.pallas_call(
        policy_kernel,
        grid=grid,
        out_shape=jax.ShapeDtypeStruct((b_pad, 2), jnp.float32),
        in_specs=[
            # x: batch-tiled, pipelined against compute.
            pl.BlockSpec((tile_b, D_in), lambda i: (i, 0), memory_space=vmem),
            # Weights / hidden bias: constant block index -> stay resident.
            pl.BlockSpec((D_in, H), lambda i: (0, 0), memory_space=vmem),
            pl.BlockSpec((1, H), lambda i: (0, 0), memory_space=vmem),
            pl.BlockSpec((H, 2), lambda i: (0, 0), memory_space=vmem),
            # Tiny fused head bias: scalars in SMEM.
            pl.BlockSpec(memory_space=pltpu.MemorySpace.SMEM),
        ],
        out_specs=pl.BlockSpec((tile_b, 2), lambda i: (i, 0), memory_space=vmem),
        compiler_params=pltpu.CompilerParams(
            dimension_semantics=("parallel",),
        ),
    )(x, w1, b1, w2, b2)

    out = out[:B]
    return out[:, 0:1], out[:, 1:2]


def init_params(key, input_dim, out_dim, hidden_dim=64):
    """Deterministic init mirroring the PyTorch module:
    weights ~ Normal(0, 0.1), biases = 0.1.
    Weights returned pre-transposed to (in_features, out_features)."""
    del out_dim  # forward only uses the two scalar heads, as in the module
    k1, k2, k3 = jax.random.split(key, 3)
    w1 = 0.1 * jax.random.normal(k1, (input_dim, hidden_dim), jnp.float32)
    b1 = jnp.full((1, hidden_dim), 0.1, jnp.float32)
    w21 = 0.1 * jax.random.normal(k2, (hidden_dim, 1), jnp.float32)
    b21 = jnp.full((1, 1), 0.1, jnp.float32)
    w22 = 0.1 * jax.random.normal(k3, (hidden_dim, 1), jnp.float32)
    b22 = jnp.full((1, 1), 0.1, jnp.float32)
    return w1, b1, w21, b21, w22, b22


if __name__ == "__main__":
    key = jax.random.PRNGKey(0)
    k_x, k_p = jax.random.split(key)

    batch = 8
    input_dim = 16
    out_dim = 1
    hidden_dim = 64

    x = jax.random.normal(k_x, (batch, input_dim), jnp.float32)
    params = init_params(k_p, input_dim, out_dim, hidden_dim)

    action_mean, action_sigma = policy_network_forward(x, *params)
    jax.block_until_ready((action_mean, action_sigma))

    # Reference check in plain JAX (same math, outside Pallas).
    w1, b1, w21, b21, w22, b22 = params
    h1_ref = jax.nn.elu(x @ w1 + b1)
    mean_ref = jax.nn.elu(h1_ref @ w21 + b21)
    sigma_ref = jax.nn.softplus(h1_ref @ w22 + b22)
    assert jnp.allclose(action_mean, mean_ref, atol=1e-5, rtol=1e-5)
    assert jnp.allclose(action_sigma, sigma_ref, atol=1e-5, rtol=1e-5)
    assert action_mean.shape == (batch, 1) and action_sigma.shape == (batch, 1)

    print("KERNEL_OK")
</pallas_src>

<mosaic_0001>
module attributes {stable_mosaic.version = 11 : i64} {
  func.func @policy_kernel(%arg0: i32, %arg1: memref<8x16xf32, #tpu.memory_space<vmem>>, %arg2: memref<16x64xf32, #tpu.memory_space<vmem>>, %arg3: memref<1x64xf32, #tpu.memory_space<vmem>>, %arg4: memref<64x2xf32, #tpu.memory_space<vmem>>, %arg5: memref<1x2xf32, #tpu.memory_space<smem>>, %arg6: memref<8x2xf32, #tpu.memory_space<vmem>>) attributes {dimension_semantics = [#tpu.dimension_semantics<parallel>], iteration_bounds = array<i64: 1>, scalar_prefetch = 0 : i64, scratch_operands = 0 : i64, tpu.core_type = #tpu.core_type<tc>, window_params = [{transform_indices = @transform_0, window_bounds = array<i64: 8, 16>}, {pipeline_mode = #tpu.pipeline_mode<synchronous>, transform_indices = @transform_1, window_bounds = array<i64: 16, 64>}, {pipeline_mode = #tpu.pipeline_mode<synchronous>, transform_indices = @transform_2, window_bounds = array<i64: 1, 64>}, {pipeline_mode = #tpu.pipeline_mode<synchronous>, transform_indices = @transform_3, window_bounds = array<i64: 64, 2>}, {transform_indices = @transform_4, window_bounds = array<i64: 1, 2>}, {transform_indices = @transform_5, window_bounds = array<i64: 8, 2>}]} {
    %c0 = arith.constant 0 : index
    %c0_0 = arith.constant 0 : index
    %0 = vector.load %arg1[%c0, %c0_0] : memref<8x16xf32, #tpu.memory_space<vmem>>, vector<8x16xf32>
    %c0_1 = arith.constant 0 : index
    %c0_2 = arith.constant 0 : index
    %1 = vector.load %arg2[%c0_1, %c0_2] : memref<16x64xf32, #tpu.memory_space<vmem>>, vector<16x64xf32>
    %cst = arith.constant dense<0.000000e+00> : vector<8x64xf32>
    %2 = tpu.matmul %0, %1, %cst {dimension_numbers = #tpu.dot_dimension_numbers<[1], [0], [0], [1], [0, 0, 1, 1], [], []>} : vector<8x16xf32>, vector<16x64xf32>, vector<8x64xf32> -> vector<8x64xf32>
    %c0_3 = arith.constant 0 : index
    %c0_4 = arith.constant 0 : index
    %3 = vector.load %arg3[%c0_3, %c0_4] : memref<1x64xf32, #tpu.memory_space<vmem>>, vector<1x64xf32>
    %4 = vector.broadcast %3 : vector<1x64xf32> to vector<8x64xf32>
    %5 = arith.addf %2, %4 : vector<8x64xf32>
    %cst_5 = arith.constant 0.000000e+00 : f32
    %6 = vector.broadcast %cst_5 : f32 to vector<8x64xf32>
    %7 = arith.cmpf ogt, %5, %6 : vector<8x64xf32>
    %cst_6 = arith.constant 0.000000e+00 : f32
    %8 = vector.broadcast %cst_6 : f32 to vector<8x64xf32>
    %9 = arith.minimumf %5, %8 : vector<8x64xf32>
    %10 = math.exp %9 : vector<8x64xf32>
    %cst_7 = arith.constant 1.000000e+00 : f32
    %11 = vector.broadcast %cst_7 : f32 to vector<8x64xf32>
    %12 = arith.subf %10, %11 : vector<8x64xf32>
    %13 = arith.select %7, %5, %12 : vector<8x64xi1>, vector<8x64xf32>
    %c0_8 = arith.constant 0 : index
    %c0_9 = arith.constant 0 : index
    %14 = vector.load %arg4[%c0_8, %c0_9] : memref<64x2xf32, #tpu.memory_space<vmem>>, vector<64x2xf32>
    %cst_10 = arith.constant dense<0.000000e+00> : vector<8x2xf32>
    %15 = tpu.matmul %13, %14, %cst_10 {dimension_numbers = #tpu.dot_dimension_numbers<[1], [0], [0], [1], [0, 0, 1, 1], [], []>} : vector<8x64xf32>, vector<64x2xf32>, vector<8x2xf32> -> vector<8x2xf32>
    %16 = tpu.iota {dimensions = array<i32: 1>} : vector<8x2xi32>
    %c0_11 = arith.constant 0 : index
    %c0_12 = arith.constant 0 : index
    %17 = memref.load %arg5[%c0_11, %c0_12] : memref<1x2xf32, #tpu.memory_space<smem>>
    %c0_13 = arith.constant 0 : index
    %c1 = arith.constant 1 : index
    %18 = memref.load %arg5[%c0_13, %c1] : memref<1x2xf32, #tpu.memory_space<smem>>
    %c0_i32 = arith.constant 0 : i32
    %19 = vector.broadcast %c0_i32 : i32 to vector<8x2xi32>
    %20 = arith.cmpi eq, %16, %19 : vector<8x2xi32>
    %21 = vector.broadcast %17 : f32 to vector<8x2xf32>
    %22 = vector.broadcast %18 : f32 to vector<8x2xf32>
    %23 = arith.select %20, %21, %22 : vector<8x2xi1>, vector<8x2xf32>
    %24 = arith.addf %15, %23 : vector<8x2xf32>
    %c0_i32_14 = arith.constant 0 : i32
    %25 = vector.broadcast %c0_i32_14 : i32 to vector<8x2xi32>
    %26 = arith.cmpi eq, %16, %25 : vector<8x2xi32>
    %cst_15 = arith.constant 0.000000e+00 : f32
    %27 = vector.broadcast %cst_15 : f32 to vector<8x2xf32>
    %28 = arith.cmpf ogt, %24, %27 : vector<8x2xf32>
    %cst_16 = arith.constant 0.000000e+00 : f32
    %29 = vector.broadcast %cst_16 : f32 to vector<8x2xf32>
    %30 = arith.minimumf %24, %29 : vector<8x2xf32>
    %31 = math.exp %30 : vector<8x2xf32>
    %cst_17 = arith.constant 1.000000e+00 : f32
    %32 = vector.broadcast %cst_17 : f32 to vector<8x2xf32>
    %33 = arith.subf %31, %32 : vector<8x2xf32>
    %34 = arith.select %28, %24, %33 : vector<8x2xi1>, vector<8x2xf32>
    %cst_18 = arith.constant 0.000000e+00 : f32
    %35 = vector.broadcast %cst_18 : f32 to vector<8x2xf32>
    %36 = arith.maximumf %24, %35 : vector<8x2xf32>
    %37 = vector.broadcast %cst_18 : f32 to vector<8x2xf32>
    %38 = arith.subf %24, %37 : vector<8x2xf32>
    %39 = arith.cmpf one, %38, %38 : vector<8x2xf32>
    %40 = vector.broadcast %cst_18 : f32 to vector<8x2xf32>
    %41 = arith.addf %24, %40 : vector<8x2xf32>
    %42 = math.absf %38 : vector<8x2xf32>
    %cst_19 = arith.constant 0.000000e+00 : f32
    %43 = vector.broadcast %cst_19 : f32 to vector<8x2xf32>
    %44 = arith.subf %43, %42 : vector<8x2xf32>
    %45 = math.exp %44 : vector<8x2xf32>
    %46 = math.log1p %45 : vector<8x2xf32>
    %47 = arith.addf %36, %46 : vector<8x2xf32>
    %48 = arith.select %39, %41, %47 : vector<8x2xi1>, vector<8x2xf32>
    %49 = arith.select %26, %34, %48 : vector<8x2xi1>, vector<8x2xf32>
    %c0_20 = arith.constant 0 : index
    %c0_21 = arith.constant 0 : index
    %50 = vector.load %arg6[%c0_20, %c0_21] : memref<8x2xf32, #tpu.memory_space<vmem>>, vector<8x2xf32>
    tpu.vector_store %arg6[%c0_20, %c0_21], %49 {strides = array<i32>} : memref<8x2xf32, #tpu.memory_space<vmem>>, vector<8x2xf32>,
    return
  }
  func.func @transform_0(%arg0: i32) -> (i32, i32) {
    %c0_i32 = arith.constant 0 : i32
    %c0_i32_0 = arith.constant 0 : i32
    return %arg0, %c0_i32 : i32, i32
  }
  func.func @transform_1(%arg0: i32) -> (i32, i32) {
    %c0_i32 = arith.constant 0 : i32
    %c0_i32_0 = arith.constant 0 : i32
    %c0_i32_1 = arith.constant 0 : i32
    return %c0_i32, %c0_i32_0 : i32, i32
  }
  func.func @transform_2(%arg0: i32) -> (i32, i32) {
    %c0_i32 = arith.constant 0 : i32
    %c0_i32_0 = arith.constant 0 : i32
    %c0_i32_1 = arith.constant 0 : i32
    return %c0_i32, %c0_i32_0 : i32, i32
  }
  func.func @transform_3(%arg0: i32) -> (i32, i32) {
    %c0_i32 = arith.constant 0 : i32
    %c0_i32_0 = arith.constant 0 : i32
    %c0_i32_1 = arith.constant 0 : i32
    return %c0_i32, %c0_i32_0 : i32, i32
  }
  func.func @transform_4(%arg0: i32) -> (i32, i32) {
    %c0_i32 = arith.constant 0 : i32
    %c0_i32_0 = arith.constant 0 : i32
    %c0_i32_1 = arith.constant 0 : i32
    return %c0_i32, %c0_i32_0 : i32, i32
  }
  func.func @transform_5(%arg0: i32) -> (i32, i32) {
    %c0_i32 = arith.constant 0 : i32
    %c0_i32_0 = arith.constant 0 : i32
    return %arg0, %c0_i32 : i32, i32
  }
}

</mosaic_0001>

<bundles_post_ra>
// kernel: tpu_custom_call.1
= control target key start
LH: loop header
LB: loop body
LE: loop exit
PB: predicated region body
PF: predicated region fallthrough
CT: control target
= control target key end

     0   :  { %10 = vsyncpa [#allocation3], 0  ;;  %s408_s0 = inlined_call_operand.vmem [shape: f32[8,16], index: 0, kind: input, shape index: {}]   ;;  %s409_s1 = inlined_call_operand.vmem [shape: f32[16,64], index: 1, kind: input, shape index: {}]   ;;  %s410_s2 = inlined_call_operand.vmem [shape: f32[1,64], index: 2, kind: input, shape index: {}]   ;;  %s411_s3 = inlined_call_operand.vmem [shape: f32[64,2], index: 3, kind: input, shape index: {}]   ;;  %s412_s4 = inlined_call_operand.vmem [shape: f32[1,2], index: 4, kind: input, shape index: {}]   ;;  %s413_s5 = inlined_call_operand.vmem [shape: f32[8,2], index: 5, kind: output, shape index: {}]  }
   0x1   :  { %s25_s20 = sshll.u32 %s412_s4, 4  ;;  %s26_s20 = int_to_ptr.vmem [resolvable:$true] %s25_s20 }
   0x2   :  { %s316_s21 = scalar_lea.vmem %s26_s20, 16  ;;  %p321_p1 = scmp.lt.s32.totalorder %s26_s20, %s26_s20 }
   0x3   :  { %p317_p0 = scmp.ne.s32.totalorder %s26_s20, %s316_s21  ;;  %p322_p2 = scmp.lt.s32.totalorder %s316_s21, %s316_s21 }
   0x5   :  { %p323_p3 = por %p322_p2, %p321_p1 }
   0x7   :  { %p324_p4 = pnand %p323_p3, %p317_p0 }
   0x9   :  { %327 = shalt.err (!%p324_p4)
}
   0xa   :  { %s330_s22 = smov [#allocation2]  }
   0xb   :  { %28 = dma.vmem_to_smem %s26_s20, 16, %s330_s22, [#allocation3]  }
   0xc   :  { %328 = dma.done.wait [#allocation3], 16  }
   0xd   :  { %329 = vsyncadd [#allocation3], 4294967280 }
   0xe   :  { %32 = sfence }
   0xf   :  { %v34_v0 = vld [vmem:[%s409_s1] sm:$0xff]  ;;  %v35_v1 = vld [vmem:[%s409_s1 + $0x8] sm:$0xff]  ;;  %v331_v2 = vmov 0.0|0.0   ;;  %vm332_vm0 = vmmov 0   ;;  %v333_v4 = vmov 0.0   ;;  %vm43_vm1 = vcmask 130048  }
  0x10   :  { %289 = vmatprep.subr.bf16.mxu0 %v331_v2  ;;  %v290_v3 = vpack.c.bf16 %v35_v1, %v34_v0  ;;  %267 = vmatprep.mubr.msk.f32.mxu0 %vm332_vm0, %v333_v4  ;;  %v33_v5 = vld [vmem:[%s408_s0] sm:$0xff]  ;;  %v124_v7 = vld [vmem:[%s411_s3 + $0x8] sm:$0xff]  ;;  %v125_v9 = vld [vmem:[%s411_s3 + $0x10] sm:$0xff]  ;;  %vm139_vm2 = vcmask 523264   ;;  %v131_v27 = vlaneseq  ;;  %s248_s19 = sld [smem:[#allocation2 + $0x1]]  ;;  %vm238_vm8 = vcmask 15360  }
  0x11   :  { %292 = vmatprep.subr.bf16.mxu1 %v331_v2  ;;  %286 = vmatprep.mubr.msk.f32.mxu1 %vm332_vm0, %v333_v4  ;;  %v123_v6 = vld [vmem:[%s411_s3] sm:$0xff]  ;;  %v126_v10 = vld [vmem:[%s411_s3 + $0x18] sm:$0xff]  ;;  %v128_v13 = vld [vmem:[%s411_s3 + $0x28] sm:$0xff] }
  0x12   :  { %291 = vmatpush3.bf16.msra.mxu0 %v290_v3  ;;  %v293_v8 = vpack.c.bf16 %v124_v7, %v123_v6  ;;  %v127_v11 = vld [vmem:[%s411_s3 + $0x20] sm:$0xff]  ;;  %v296_v12 = vpack.c.bf16 %v126_v10, %v125_v9  ;;  %v129_v15 = vld [vmem:[%s411_s3 + $0x30] sm:$0xff]  ;;  %v130_v16 = vld [vmem:[%s411_s3 + $0x38] sm:$0xff]  ;;  %s133_s3 = sld [smem:[#allocation2]]  ;;  %v132_v28 = vand.u32 127, %v131_v27 }
  0x13   :  { %v299_v14 = vpack.c.bf16 %v128_v13, %v127_v11  ;;  %v302_v17 = vpack.c.bf16 %v130_v16, %v129_v15  ;;  %v245_v18 = vld [vmem:[%s410_s2] ss:$0 sm:$0xff] }
  0x14   :  { %294 = vmatpush3.bf16.msra.mxu1 %v293_v8  ;;  %vm135_vm4 = vcmp.eq.s32.totalorder %v132_v28, 0 }
  0x15   :  { %268 = vmatmul.mubr.msk.f32.vlgmr.msra.gmra.mrb[0].mxu0 %vm43_vm1, %v33_v5  ;;  %295 = vmatprep.subr.bf16.mxu1 %v331_v2 }
  0x16   :  { %v137_v30 = vstv %s248_s19 }
  0x18   :  { %297 = vmatpush3.bf16.msra.mxu1 %v296_v12  ;;  %v136_v29 = vstv %s133_s3 }
  0x19   :  { %298 = vmatprep.subr.bf16.mxu1 %v331_v2  ;;  %v138_v31 = vsel %vm135_vm4, %v136_v29, %v137_v30 }
  0x1c   :  { %300 = vmatpush3.bf16.msra.mxu1 %v299_v14 }
  0x1d   :  { %301 = vmatprep.subr.bf16.mxu1 %v331_v2 }
  0x20   :  { %303 = vmatpush3.bf16.msra.mxu1 %v302_v17 }
  0xe8   :  { %v113_v19 = vpop.f32.mrb[0].mxu0 }
  0xe9   :  { %v114_v20 = vadd.f32 %v245_v18, %v113_v19  ;;  %v269_v21 = vpop.f32.mrb[1].mxu0 }
  0xeb   :  { %v118_v22 = vmin.f32 %v114_v20, 0.0  ;;  %vm117_vm3 = vcmp.gt.f32.partialorder %v114_v20, 0.0 }
  0xed   :  { %v119_v23 = vmul.f32 1.442695, %v118_v22 }
  0xef   :  { %308 = vpow2.f32 %v119_v23 }
  0xf9   :  { %v309_v24 = vpop.eup %308 }
  0xfa   :  { %v247_v25 = vadd.f32 -1.0, %v309_v24 }
  0xfc   :  { %v122_v26 = vsel %vm117_vm3, %v114_v20, %v247_v25 }
  0xfd   :  { %287 = vmatmul.mubr.msk.f32.vlgmr.msra.gmra.mrb[0].mxu1 %vm139_vm2, %v122_v26 }
 0x1d0   :  { %v209_v32 = vpop.f32.mrb[0].mxu1 }
 0x1d1   :  { %v210_v33 = vadd.f32 %v209_v32, %v138_v31  ;;  %v288_v34 = vpop.f32.mrb[1].mxu1 }
 0x1d3   :  { %v222_v35 = vand.u32 2147483647, %v210_v33  ;;  %v214_v38 = vmin.f32 %v210_v33, 0.0  ;;  %v219_v50 = vmax.f32 %v210_v33, 0.0  ;;  %vm213_vm6 = vcmp.gt.f32.partialorder %v210_v33, 0.0 }
 0x1d4   :  { %vm220_vm7 = vcmp.ne.f32.partialorder %v210_v33, %v210_v33 }
 0x1d5   :  { %v223_v36 = vsub.f32 0.0, %v222_v35  ;;  %v215_v39 = vmul.f32 1.442695, %v214_v38 }
 0x1d7   :  { %v224_v37 = vmul.f32 1.442695, %v223_v36 }
 0x1d9   :  { %310 = vpow2.f32 %v224_v37 }
 0x1da   :  { %312 = vpow2.f32 %v215_v39 }
 0x1e3   :  { %v311_v40 = vpop.eup %310 }
 0x1e4   :  { %v226_v41 = vadd.f32 1.0, %v311_v40  ;;  %v229_v42 = vmul.f32 -0.5, %v311_v40  ;;  %v232_v44 = vand.u32 2147483647, %v311_v40  ;;  %v313_v45 = vpop.eup %312 }
 0x1e5   :  { %v250_v49 = vadd.f32 -1.0, %v313_v45 }
 0x1e6   :  { %314 = vlog2.f32 %v226_v41  ;;  %v230_v43 = vadd.f32 1.0, %v229_v42  ;;  %vm233_vm5 = vcmp.lt.f32.partialorder %v232_v44, 0.0004427343 }
 0x1e7   :  { %v218_v53 = vsel %vm213_vm6, %v210_v33, %v250_v49 }
 0x1e8   :  { %v231_v48 = vmul.f32 %v311_v40, %v230_v43 }
 0x1f0   :  { %v315_v46 = vpop.eup %314 }
 0x1f1   :  { %v228_v47 = vmul.f32 0.6931472, %v315_v46 }
 0x1f3   :  { %v234_v51 = vsel %vm233_vm5, %v231_v48, %v228_v47 }
 0x1f4   :  { %v235_v52 = vadd.f32 %v234_v51, %v219_v50 }
 0x1f6   :  { %v236_v54 = vsel %vm220_vm7, %v210_v33, %v235_v52 }
 0x1f7   :  { %v237_v55 = vsel %vm135_vm4, %v218_v53, %v236_v54 }
 0x1f8   :  { %239 = vst.msk [vmem:[%s413_s5] sm:$0xff] %vm238_vm8, %v237_v55 }
 0x1f9   :  { %244 = vsyncpa [#allocation3], 1 }

</bundles_post_ra>
